<compile_context>
chip_gen: v7x
topology: tpu7x:2x2x1
jax: 0.10.0
libtpu: 0.0.40
codegen_flags: <defaults>
</compile_context>

<pallas_src>
import jax
import jax.numpy as jnp
from jax.experimental import pallas as pl
from jax.experimental.pallas import tpu as pltpu

EPS = 1e-5
LANE = 128


# ----------------------------------------------------------------------------
# Kernel: Nb fused Predictor invocations per grid step.
# ----------------------------------------------------------------------------
def predictor_batched_kernel(x_ref, w1_ref, g_ref, b_ref, w2_ref, b2_ref, o_ref):
    nb, B, Dp = x_ref.shape
    Hp = w1_ref.shape[1]

    # ---- Linear 1 (no bias): collapse (Nb, B) into the MXU M dimension ----
    x2 = x_ref[...].reshape(nb * B, Dp).astype(w1_ref.dtype)
    h2 = jnp.dot(x2, w1_ref[...], preferred_element_type=jnp.float32)   # (nb*B, Hp)
    h = h2.reshape(nb, B, Hp)

    # ---- BatchNorm1d, per-invocation stats, one-pass sum / sum-of-squares --
    inv_b = jnp.float32(1.0 / B)
    s1 = jnp.sum(h, axis=1, keepdims=True)                              # (nb, 1, Hp)
    s2 = jnp.sum(h * h, axis=1, keepdims=True)                          # (nb, 1, Hp)
    mean = s1 * inv_b
    var = s2 * inv_b - mean * mean                                      # biased var
    scale = g_ref[...] * jax.lax.rsqrt(var + EPS)                       # (nb, 1, Hp)
    shift = b_ref[...] - mean * scale                                   # (nb, 1, Hp)

    # ---- fused BN affine + ReLU ----
    r = jnp.maximum(h * scale + shift, 0.0)                             # (nb, B, Hp)

    # ---- Linear 2 (with bias) ----
    r2 = r.reshape(nb * B, Hp).astype(w2_ref.dtype)
    o2 = jnp.dot(r2, w2_ref[...], preferred_element_type=jnp.float32) + b2_ref[...]
    o_ref[...] = o2.reshape(nb, B, Dp).astype(o_ref.dtype)


# ----------------------------------------------------------------------------
# Host-side parameter prep: done ONCE (pre-transpose + lane-pad), reused.
# ----------------------------------------------------------------------------
def _pad_axis(a, axis, mult):
    pad = (-a.shape[axis]) % mult
    if pad == 0:
        return a
    widths = [(0, 0)] * a.ndim
    widths[axis] = (0, pad)
    return jnp.pad(a, widths)


def prepare_predictor_params(w1, gamma, beta, w2, b2, param_dtype=jnp.float32):
    """Pre-transpose weights and zero-pad feature dims to multiples of 128.

    Call once at module init; the returned dict is reused by every forward.
    (param_dtype=jnp.bfloat16 halves weight bytes / doubles MXU throughput for
    large shapes; keep f32 for the tight-tolerance self-test.)
    """
    H, Dout = w1.shape
    w1_t = _pad_axis(_pad_axis(jnp.asarray(w1, param_dtype).T, 1, LANE), 0, LANE)  # (Dp, Hp)
    w2_t = _pad_axis(_pad_axis(jnp.asarray(w2, param_dtype).T, 1, LANE), 0, LANE)  # (Hp, Dp)
    gp = _pad_axis(jnp.asarray(gamma, jnp.float32).reshape(1, H), 1, LANE)         # (1, Hp)
    bp = _pad_axis(jnp.asarray(beta, jnp.float32).reshape(1, H), 1, LANE)          # (1, Hp)
    b2p = _pad_axis(jnp.asarray(b2, jnp.float32).reshape(1, Dout), 1, LANE)        # (1, Dp)
    return dict(w1_t=w1_t, gp=gp, bp=bp, w2_t=w2_t, b2p=b2p, out_dim=Dout)


# ----------------------------------------------------------------------------
# Forward wrappers.
# ----------------------------------------------------------------------------
def predictor_forward_batched(xs, params, *, target_grid_steps=2,
                              vmem_budget_bytes=8 << 20):
    """N stacked invocations: xs (N, B, out_dim) -> (N, B, out_dim).

    Shared parameters; per-invocation BatchNorm statistics. Nb invocations are
    fused per grid step (bigger MXU M, amortized step overhead) while keeping
    >= target_grid_steps grid steps so v7x's 2 TensorCores both get work.
    """
    w1_t, gp, bp = params["w1_t"], params["gp"], params["bp"]
    w2_t, b2p, Dout = params["w2_t"], params["b2p"], params["out_dim"]
    N, B, D = xs.shape
    assert D == Dout, f"expected last dim {Dout}, got {D}"
    Dp, Hp = w1_t.shape

    xp = _pad_axis(xs.astype(jnp.float32), 2, LANE)      # no-op when lane-aligned

    # Invocations per grid step: cap so double-buffered x + out blocks
    # (~4 * Nb * B * Dp * 4 bytes) stay within the VMEM budget, and split into
    # >= target_grid_steps steps when N allows.
    bytes_per_invocation = B * Dp * 4
    nb_vmem_cap = max(1, int(vmem_budget_bytes // (4 * bytes_per_invocation)))
    nb = max(1, min(pl.cdiv(N, target_grid_steps), nb_vmem_cap))
    steps = pl.cdiv(N, nb)
    n_pad = steps * nb
    if n_pad != N:
        # Padded (all-zero) invocations are harmless (var+eps > 0) and sliced off.
        xp = jnp.pad(xp, ((0, n_pad - N), (0, 0), (0, 0)))

    out_p = pl.pallas_call(
        predictor_batched_kernel,
        out_shape=jax.ShapeDtypeStruct((n_pad, B, Dp), jnp.float32),
        grid=(steps,),
        in_specs=[
            pl.BlockSpec((nb, B, Dp), lambda n: (n, 0, 0)),   # x: Nb invocations / step
            pl.BlockSpec((Dp, Hp), lambda n: (0, 0)),         # W1^T (resident)
            pl.BlockSpec((1, Hp), lambda n: (0, 0)),          # gamma
            pl.BlockSpec((1, Hp), lambda n: (0, 0)),          # beta
            pl.BlockSpec((Hp, Dp), lambda n: (0, 0)),         # W2^T (resident)
            pl.BlockSpec((1, Dp), lambda n: (0, 0)),          # b2
        ],
        out_specs=pl.BlockSpec((nb, B, Dp), lambda n: (n, 0, 0)),
        compiler_params=pltpu.CompilerParams(
            dimension_semantics=("parallel",)),
    )(xp, w1_t, gp, bp, w2_t, b2p)

    if n_pad != N or Dp != Dout:
        out_p = out_p[:N, :, :Dout]
    return out_p


def predictor_forward(x, params):
    """Single invocation: x (B, out_dim) -> (B, out_dim)."""
    # TODO(synk): for very large single-call B (>= ~512) a two-pass / B-tiled
    # structure would bound vreg pressure; full-block is fine at module scales.
    return predictor_forward_batched(x[None], params)[0]


# ----------------------------------------------------------------------------
# Pure-JAX reference (train-mode BatchNorm semantics of the PyTorch module).
# ----------------------------------------------------------------------------
def reference_forward(x, w1, gamma, beta, w2, b2):
    hp = jax.lax.Precision.HIGHEST
    h = jnp.dot(x, w1.T, precision=hp)
    mean = h.mean(axis=0, keepdims=True)
    var = ((h - mean) ** 2).mean(axis=0, keepdims=True)
    hn = (h - mean) / jnp.sqrt(var + EPS) * gamma + beta
    r = jnp.maximum(hn, 0.0)
    return jnp.dot(r, w2.T, precision=hp) + b2


if __name__ == "__main__":
    # Module defaults: out_dim=256; hidden=128 (lane-aligned -> padding no-ops).
    B, OUT_DIM, HIDDEN, N = 8, 256, 128, 4

    key = jax.random.PRNGKey(0)
    kx, kxs, kw1, kw2, kb2 = jax.random.split(key, 5)

    x = jax.random.normal(kx, (B, OUT_DIM), dtype=jnp.float32)
    xs = jax.random.normal(kxs, (N, B, OUT_DIM), dtype=jnp.float32)

    # Deterministic parameter init (PyTorch-like fan-in uniform ranges).
    bound1 = 1.0 / (OUT_DIM ** 0.5)
    w1 = jax.random.uniform(kw1, (HIDDEN, OUT_DIM), jnp.float32, -bound1, bound1)
    gamma = jnp.ones((HIDDEN,), jnp.float32)      # BatchNorm1d weight init = 1
    beta = jnp.zeros((HIDDEN,), jnp.float32)      # BatchNorm1d bias init = 0
    bound2 = 1.0 / (HIDDEN ** 0.5)
    w2 = jax.random.uniform(kw2, (OUT_DIM, HIDDEN), jnp.float32, -bound2, bound2)
    b2 = jax.random.uniform(kb2, (OUT_DIM,), jnp.float32, -bound2, bound2)

    # Parameter prep (transpose + pad) done ONCE and reused by every call.
    params = prepare_predictor_params(w1, gamma, beta, w2, b2)

    # --- single invocation ---
    out = jax.block_until_ready(predictor_forward(x, params))
    ref = reference_forward(x, w1, gamma, beta, w2, b2)
    assert out.shape == (B, OUT_DIM)
    assert jnp.allclose(out, ref, atol=5e-4, rtol=5e-4), "single-call mismatch"

    # --- batched (grid) invocations: Nb=2 fused per step, 2 parallel steps ---
    outs = jax.block_until_ready(predictor_forward_batched(xs, params))
    assert outs.shape == (N, B, OUT_DIM)
    for n in range(N):
        refn = reference_forward(xs[n], w1, gamma, beta, w2, b2)
        assert jnp.allclose(outs[n], refn, atol=5e-4, rtol=5e-4), \
            f"batched mismatch at invocation {n}"

    # TODO(synk): eval-mode BatchNorm (running_mean/running_var tracking) not
    # modeled; this matches the module's training-mode forward only.
    print("KERNEL_OK")
</pallas_src>

<mosaic_0001>
module attributes {stable_mosaic.version = 11 : i64} {
  func.func @predictor_batched_kernel(%arg0: i32, %arg1: memref<1x8x256xf32, #tpu.memory_space<vmem>>, %arg2: memref<256x128xf32, #tpu.memory_space<vmem>>, %arg3: memref<1x128xf32, #tpu.memory_space<vmem>>, %arg4: memref<1x128xf32, #tpu.memory_space<vmem>>, %arg5: memref<128x256xf32, #tpu.memory_space<vmem>>, %arg6: memref<1x256xf32, #tpu.memory_space<vmem>>, %arg7: memref<1x8x256xf32, #tpu.memory_space<vmem>>) attributes {dimension_semantics = [#tpu.dimension_semantics<parallel>], iteration_bounds = array<i64: 1>, scalar_prefetch = 0 : i64, scratch_operands = 0 : i64, tpu.core_type = #tpu.core_type<tc>, window_params = [{transform_indices = @transform_0, window_bounds = array<i64: 1, 8, 256>}, {pipeline_mode = #tpu.pipeline_mode<synchronous>, transform_indices = @transform_1, window_bounds = array<i64: 256, 128>}, {pipeline_mode = #tpu.pipeline_mode<synchronous>, transform_indices = @transform_2, window_bounds = array<i64: 1, 128>}, {pipeline_mode = #tpu.pipeline_mode<synchronous>, transform_indices = @transform_3, window_bounds = array<i64: 1, 128>}, {pipeline_mode = #tpu.pipeline_mode<synchronous>, transform_indices = @transform_4, window_bounds = array<i64: 128, 256>}, {pipeline_mode = #tpu.pipeline_mode<synchronous>, transform_indices = @transform_5, window_bounds = array<i64: 1, 256>}, {transform_indices = @transform_6, window_bounds = array<i64: 1, 8, 256>}]} {
    %c0 = arith.constant 0 : index
    %c0_0 = arith.constant 0 : index
    %c0_1 = arith.constant 0 : index
    %0 = vector.load %arg1[%c0, %c0_0, %c0_1] : memref<1x8x256xf32, #tpu.memory_space<vmem>>, vector<1x8x256xf32>
    %1 = vector.shape_cast %0 : vector<1x8x256xf32> to vector<8x256xf32>
    %c0_2 = arith.constant 0 : index
    %c0_3 = arith.constant 0 : index
    %2 = vector.load %arg2[%c0_2, %c0_3] : memref<256x128xf32, #tpu.memory_space<vmem>>, vector<256x128xf32>
    %cst = arith.constant dense<0.000000e+00> : vector<8x128xf32>
    %3 = tpu.matmul %1, %2, %cst {dimension_numbers = #tpu.dot_dimension_numbers<[1], [0], [0], [1], [0, 0, 1, 1], [], []>} : vector<8x256xf32>, vector<256x128xf32>, vector<8x128xf32> -> vector<8x128xf32>
    %4 = vector.shape_cast %3 : vector<8x128xf32> to vector<1x8x128xf32>
    %cst_4 = arith.constant dense<0.000000e+00> : vector<1x128xf32>
    %5 = vector.multi_reduction <add>, %4, %cst_4 [1] : vector<1x8x128xf32> to vector<1x128xf32>
    %6 = vector.shape_cast %5 : vector<1x128xf32> to vector<1x1x128xf32>
    %7 = arith.mulf %4, %4 : vector<1x8x128xf32>
    %cst_5 = arith.constant dense<0.000000e+00> : vector<1x128xf32>
    %8 = vector.multi_reduction <add>, %7, %cst_5 [1] : vector<1x8x128xf32> to vector<1x128xf32>
    %9 = vector.shape_cast %8 : vector<1x128xf32> to vector<1x1x128xf32>
    %cst_6 = arith.constant 1.250000e-01 : f32
    %10 = vector.broadcast %cst_6 : f32 to vector<1x1x128xf32>
    %11 = arith.mulf %6, %10 : vector<1x1x128xf32>
    %cst_7 = arith.constant 1.250000e-01 : f32
    %12 = vector.broadcast %cst_7 : f32 to vector<1x1x128xf32>
    %13 = arith.mulf %9, %12 : vector<1x1x128xf32>
    %14 = arith.mulf %11, %11 : vector<1x1x128xf32>
    %15 = arith.subf %13, %14 : vector<1x1x128xf32>
    %c0_8 = arith.constant 0 : index
    %c0_9 = arith.constant 0 : index
    %16 = vector.load %arg3[%c0_8, %c0_9] : memref<1x128xf32, #tpu.memory_space<vmem>>, vector<1x128xf32>
    %cst_10 = arith.constant 9.99999974E-6 : f32
    %17 = vector.broadcast %cst_10 : f32 to vector<1x1x128xf32>
    %18 = arith.addf %15, %17 : vector<1x1x128xf32>
    %19 = math.rsqrt %18 : vector<1x1x128xf32>
    %20 = vector.shape_cast %16 : vector<1x128xf32> to vector<1x1x128xf32>
    %21 = arith.mulf %20, %19 : vector<1x1x128xf32>
    %c0_11 = arith.constant 0 : index
    %c0_12 = arith.constant 0 : index
    %22 = vector.load %arg4[%c0_11, %c0_12] : memref<1x128xf32, #tpu.memory_space<vmem>>, vector<1x128xf32>
    %23 = arith.mulf %11, %21 : vector<1x1x128xf32>
    %24 = vector.shape_cast %22 : vector<1x128xf32> to vector<1x1x128xf32>
    %25 = arith.subf %24, %23 : vector<1x1x128xf32>
    %26 = vector.broadcast %21 : vector<1x1x128xf32> to vector<1x8x128xf32>
    %27 = arith.mulf %4, %26 : vector<1x8x128xf32>
    %28 = vector.broadcast %25 : vector<1x1x128xf32> to vector<1x8x128xf32>
    %29 = arith.addf %27, %28 : vector<1x8x128xf32>
    %cst_13 = arith.constant 0.000000e+00 : f32
    %30 = vector.broadcast %cst_13 : f32 to vector<1x8x128xf32>
    %31 = arith.maximumf %29, %30 : vector<1x8x128xf32>
    %32 = vector.shape_cast %31 : vector<1x8x128xf32> to vector<8x128xf32>
    %c0_14 = arith.constant 0 : index
    %c0_15 = arith.constant 0 : index
    %33 = vector.load %arg5[%c0_14, %c0_15] : memref<128x256xf32, #tpu.memory_space<vmem>>, vector<128x256xf32>
    %cst_16 = arith.constant dense<0.000000e+00> : vector<8x256xf32>
    %34 = tpu.matmul %32, %33, %cst_16 {dimension_numbers = #tpu.dot_dimension_numbers<[1], [0], [0], [1], [0, 0, 1, 1], [], []>} : vector<8x128xf32>, vector<128x256xf32>, vector<8x256xf32> -> vector<8x256xf32>
    %c0_17 = arith.constant 0 : index
    %c0_18 = arith.constant 0 : index
    %35 = vector.load %arg6[%c0_17, %c0_18] : memref<1x256xf32, #tpu.memory_space<vmem>>, vector<1x256xf32>
    %36 = vector.broadcast %35 : vector<1x256xf32> to vector<8x256xf32>
    %37 = arith.addf %34, %36 : vector<8x256xf32>
    %38 = vector.shape_cast %37 : vector<8x256xf32> to vector<1x8x256xf32>
    %c0_19 = arith.constant 0 : index
    %c0_20 = arith.constant 0 : index
    %c0_21 = arith.constant 0 : index
    %39 = vector.load %arg7[%c0_19, %c0_20, %c0_21] : memref<1x8x256xf32, #tpu.memory_space<vmem>>, vector<1x8x256xf32>
    tpu.vector_store %arg7[%c0_19, %c0_20, %c0_21], %38 {strides = array<i32>} : memref<1x8x256xf32, #tpu.memory_space<vmem>>, vector<1x8x256xf32>,
    return
  }
  func.func @transform_0(%arg0: i32) -> (i32, i32, i32) {
    %c0_i32 = arith.constant 0 : i32
    %c0_i32_0 = arith.constant 0 : i32
    %c0_i32_1 = arith.constant 0 : i32
    return %arg0, %c0_i32, %c0_i32_0 : i32, i32, i32
  }
  func.func @transform_1(%arg0: i32) -> (i32, i32) {
    %c0_i32 = arith.constant 0 : i32
    %c0_i32_0 = arith.constant 0 : i32
    %c0_i32_1 = arith.constant 0 : i32
    return %c0_i32, %c0_i32_0 : i32, i32
  }
  func.func @transform_2(%arg0: i32) -> (i32, i32) {
    %c0_i32 = arith.constant 0 : i32
    %c0_i32_0 = arith.constant 0 : i32
    %c0_i32_1 = arith.constant 0 : i32
    return %c0_i32, %c0_i32_0 : i32, i32
  }
  func.func @transform_3(%arg0: i32) -> (i32, i32) {
    %c0_i32 = arith.constant 0 : i32
    %c0_i32_0 = arith.constant 0 : i32
    %c0_i32_1 = arith.constant 0 : i32
    return %c0_i32, %c0_i32_0 : i32, i32
  }
  func.func @transform_4(%arg0: i32) -> (i32, i32) {
    %c0_i32 = arith.constant 0 : i32
    %c0_i32_0 = arith.constant 0 : i32
    %c0_i32_1 = arith.constant 0 : i32
    return %c0_i32, %c0_i32_0 : i32, i32
  }
  func.func @transform_5(%arg0: i32) -> (i32, i32) {
    %c0_i32 = arith.constant 0 : i32
    %c0_i32_0 = arith.constant 0 : i32
    %c0_i32_1 = arith.constant 0 : i32
    return %c0_i32, %c0_i32_0 : i32, i32
  }
  func.func @transform_6(%arg0: i32) -> (i32, i32, i32) {
    %c0_i32 = arith.constant 0 : i32
    %c0_i32_0 = arith.constant 0 : i32
    %c0_i32_1 = arith.constant 0 : i32
    return %arg0, %c0_i32, %c0_i32_0 : i32, i32, i32
  }
}

</mosaic_0001>

<bundles_post_ra>
// kernel: tpu_custom_call.1
= control target key start
LH: loop header
LB: loop body
LE: loop exit
PB: predicated region body
PF: predicated region fallthrough
CT: control target
= control target key end

     0   :  { %11 = vsyncpa [#allocation3], 0  ;;  %s644_s0 = inlined_call_operand.hbm [shape: f32[1,8,256], index: 0, kind: input, shape index: {}]   ;;  %s645_s1 = inlined_call_operand.hbm [shape: f32[256,128], index: 1, kind: input, shape index: {}]   ;;  %s646_s2 = inlined_call_operand.vmem [shape: f32[1,128], index: 2, kind: input, shape index: {}]   ;;  %s647_s3 = inlined_call_operand.vmem [shape: f32[1,128], index: 3, kind: input, shape index: {}]   ;;  %s648_s4 = inlined_call_operand.hbm [shape: f32[128,256], index: 4, kind: input, shape index: {}]   ;;  %s649_s5 = inlined_call_operand.vmem [shape: f32[1,256], index: 5, kind: input, shape index: {}]   ;;  %s650_s6 = inlined_call_operand.hbm [shape: f32[1,8,256], index: 6, kind: output, shape index: {}]  }
   0x1   :  { %12 = vsyncpa [#allocation6], 0 }
   0x2   :  { %13 = vsyncpa [#allocation4], 0  ;;  %s543_s21 = smov [#allocation5]   ;;  %s449_s25 = scalar_lea.hbm %s645_s1, 4096 }
   0x3   :  { %s29_s22 = sshll.u32 %s543_s21, 4  ;;  %p450_p0 = scmp.ne.s32.totalorder %s645_s1, %s449_s25  ;;  %s30_s22 = int_to_ptr.vmem [resolvable:$true] %s29_s22 }
   0x4   :  { %p453_p1 = scmp.lt.u32.totalorder %s449_s25, %s645_s1 }
   0x6   :  { %p455_p2 = pnand %p453_p1, %p450_p0 }
   0x8   :  { %458 = shalt.err (!%p455_p2)
}
   0x9   :  { %s459_s30 = scalar_lea.vmem %s30_s22, 4096  ;;  %p464_p4 = scmp.lt.s32.totalorder %s30_s22, %s30_s22 }
   0xa   :  { %p460_p3 = scmp.ne.s32.totalorder %s30_s22, %s459_s30  ;;  %p465_p5 = scmp.lt.s32.totalorder %s459_s30, %s459_s30 }
   0xc   :  { %p466_p6 = por %p465_p5, %p464_p4 }
   0xe   :  { %p467_p7 = pnand %p466_p6, %p460_p3 }
  0x10   :  { %470 = shalt.err (!%p467_p7)
}
  0x11   :  { %s544_s7 = smov 128   ;;  %s545_s8 = smov 8  }
  0x12   :  { %35 = dma.hbm_to_vmem [thread:$0]  %s645_s1, 4096, %s30_s22, [#allocation6], %s544_s7, %s544_s7, %s545_s8  }
  0x13   :  { %s546_s11 = smov [#allocation2]   ;;  %s547_s13 = smov [#allocation7]  }
  0x14   :  { %s20_s12 = sshll.u32 %s546_s11, 4  ;;  %s45_s14 = sshll.u32 %s547_s13, 4  ;;  %s21_s12 = int_to_ptr.vmem [resolvable:$true] %s20_s12  ;;  %s46_s14 = int_to_ptr.vmem [resolvable:$true] %s45_s14 }
  0x15   :  { %s471_s17 = scalar_lea.hbm %s644_s0, 256 }
  0x16   :  { %p472_p8 = scmp.ne.s32.totalorder %s644_s0, %s471_s17  ;;  %p475_p9 = scmp.lt.u32.totalorder %s471_s17, %s644_s0 }
  0x18   :  { %p477_p10 = pnand %p475_p9, %p472_p8 }
  0x1a   :  { %480 = shalt.err (!%p477_p10)
}
  0x1b   :  { %s481_s1 = scalar_lea.vmem %s21_s12, 256  ;;  %p486_p12 = scmp.lt.s32.totalorder %s21_s12, %s21_s12 }
  0x1c   :  { %p482_p11 = scmp.ne.s32.totalorder %s21_s12, %s481_s1  ;;  %p487_p13 = scmp.lt.s32.totalorder %s481_s1, %s481_s1 }
  0x1e   :  { %p488_p0 = por %p487_p13, %p486_p12 }
  0x20   :  { %p489_p1 = pnand %p488_p0, %p482_p11 }
  0x22   :  { %492 = shalt.err (!%p489_p1)
}
  0x23   :  { %23 = dma.hbm_to_vmem [thread:$0]  %s644_s0, 256, %s21_s12, [#allocation3]  }
  0x24   :  { %s493_s26 = scalar_lea.hbm %s648_s4, 4096 }
  0x25   :  { %p494_p2 = scmp.ne.s32.totalorder %s648_s4, %s493_s26  ;;  %p497_p3 = scmp.lt.u32.totalorder %s493_s26, %s648_s4 }
  0x27   :  { %p499_p4 = pnand %p497_p3, %p494_p2 }
  0x29   :  { %502 = shalt.err (!%p499_p4)
}
  0x2a   :  { %s503_s7 = scalar_lea.vmem %s46_s14, 4096  ;;  %p508_p6 = scmp.lt.s32.totalorder %s46_s14, %s46_s14 }
  0x2b   :  { %p504_p5 = scmp.ne.s32.totalorder %s46_s14, %s503_s7  ;;  %p509_p7 = scmp.lt.s32.totalorder %s503_s7, %s503_s7 }
  0x2d   :  { %p510_p8 = por %p509_p7, %p508_p6 }
  0x2f   :  { %p511_p9 = pnand %p510_p8, %p504_p5 }
  0x31   :  { %514 = shalt.err (!%p511_p9)
}
  0x32   :  { %s548_s0 = smov 256   ;;  %s549_s8 = smov 16  }
  0x33   :  { %51 = dma.hbm_to_vmem [thread:$0]  %s648_s4, 4096, %s46_s14, [#allocation6], %s548_s0, %s548_s0, %s549_s8  }
  0x34   :  { %537 = dma.done.wait [#allocation3], 256  }
  0x35   :  { %538 = vsyncadd [#allocation3], 4294967040 }
  0x36   :  { %539 = dma.done.wait [#allocation6], 8192  }
  0x37   :  { %540 = vsyncadd [#allocation6], 4294959104  ;;  %v81_v0 = vld [vmem:[#allocation5 + $0x80] sm:$0xff]  ;;  %v82_v1 = vld [vmem:[#allocation5 + $0x88] sm:$0xff] }
  0x38   :  { %v65_v2 = vld [vmem:[#allocation5] sm:$0xff]  ;;  %v374_v3 = vpack.c.bf16 %v82_v1, %v81_v0  ;;  %v66_v4 = vld [vmem:[#allocation5 + $0x8] sm:$0xff]  ;;  %v83_v5 = vld [vmem:[#allocation5 + $0x90] sm:$0xff] }
  0x39   :  { %v84_v6 = vld [vmem:[#allocation5 + $0x98] sm:$0xff]  ;;  %v376_v7 = vpack.c.bf16 %v66_v4, %v65_v2  ;;  %v67_v9 = vld [vmem:[#allocation5 + $0x10] sm:$0xff]  ;;  %v85_v11 = vld [vmem:[#allocation5 + $0xa0] sm:$0xff] }
  0x3a   :  { %v378_v8 = vpack.c.bf16 %v84_v6, %v83_v5  ;;  %v68_v10 = vld [vmem:[#allocation5 + $0x18] sm:$0xff]  ;;  %375 = vmatprep.subr.bf16.mxu0 %v374_v3  ;;  %v86_v12 = vld [vmem:[#allocation5 + $0xa8] sm:$0xff]  ;;  %v69_v15 = vld [vmem:[#allocation5 + $0x20] sm:$0xff]  ;;  %v550_v5 = vmov 0.0  }
  0x3b   :  { %377 = vmatpush3.bf16.msra.mxu0 %v376_v7  ;;  %v380_v13 = vpack.c.bf16 %v68_v10, %v67_v9  ;;  %v382_v14 = vpack.c.bf16 %v86_v12, %v85_v11  ;;  %v70_v16 = vld [vmem:[#allocation5 + $0x28] sm:$0xff]  ;;  %v87_v17 = vld [vmem:[#allocation5 + $0xb0] sm:$0xff]  ;;  %v88_v18 = vld [vmem:[#allocation5 + $0xb8] sm:$0xff]  ;;  %314 = vmatprep.mubr.f32.mxu1 %v550_v5 }
  0x3c   :  { %379 = vmatprep.subr.bf16.mxu0 %v378_v8  ;;  %v384_v19 = vpack.c.bf16 %v70_v16, %v69_v15  ;;  %v386_v20 = vpack.c.bf16 %v88_v18, %v87_v17  ;;  %v71_v21 = vld [vmem:[#allocation5 + $0x30] sm:$0xff]  ;;  %v72_v22 = vld [vmem:[#allocation5 + $0x38] sm:$0xff]  ;;  %v89_v23 = vld [vmem:[#allocation5 + $0xc0] sm:$0xff] }
  0x3d   :  { %v90_v24 = vld [vmem:[#allocation5 + $0xc8] sm:$0xff]  ;;  %v64_v25 = vld [vmem:[#allocation2 + $0x8] sm:$0xff]  ;;  %v388_v26 = vpack.c.bf16 %v72_v22, %v71_v21  ;;  %v73_v28 = vld [vmem:[#allocation5 + $0x40] sm:$0xff] }
  0x3e   :  { %161 = vmatprep.mubr.f32.mxu0 %v64_v25  ;;  %v390_v27 = vpack.c.bf16 %v90_v24, %v89_v23  ;;  %v74_v29 = vld [vmem:[#allocation5 + $0x48] sm:$0xff]  ;;  %v91_v30 = vld [vmem:[#allocation5 + $0xd0] sm:$0xff]  ;;  %v92_v31 = vld [vmem:[#allocation5 + $0xd8] sm:$0xff] }
  0x3f   :  { %381 = vmatpush3.bf16.msra.mxu0 %v380_v13  ;;  %v392_v32 = vpack.c.bf16 %v74_v29, %v73_v28  ;;  %v394_v33 = vpack.c.bf16 %v92_v31, %v91_v30  ;;  %v75_v34 = vld [vmem:[#allocation5 + $0x50] sm:$0xff]  ;;  %v76_v35 = vld [vmem:[#allocation5 + $0x58] sm:$0xff]  ;;  %v93_v36 = vld [vmem:[#allocation5 + $0xe0] sm:$0xff] }
  0x40   :  { %383 = vmatprep.subr.bf16.mxu0 %v382_v14  ;;  %v94_v37 = vld [vmem:[#allocation5 + $0xe8] sm:$0xff]  ;;  %v396_v38 = vpack.c.bf16 %v76_v35, %v75_v34  ;;  %v77_v40 = vld [vmem:[#allocation5 + $0x60] sm:$0xff]  ;;  %v95_v42 = vld [vmem:[#allocation5 + $0xf0] sm:$0xff] }
  0x41   :  { %v398_v39 = vpack.c.bf16 %v94_v37, %v93_v36  ;;  %v78_v41 = vld [vmem:[#allocation5 + $0x68] sm:$0xff]  ;;  %v96_v43 = vld [vmem:[#allocation5 + $0xf8] sm:$0xff]  ;;  %v79_v46 = vld [vmem:[#allocation5 + $0x70] sm:$0xff] }
  0x42   :  { %v400_v44 = vpack.c.bf16 %v78_v41, %v77_v40  ;;  %v402_v45 = vpack.c.bf16 %v96_v43, %v95_v42  ;;  %v80_v47 = vld [vmem:[#allocation5 + $0x78] sm:$0xff]  ;;  %v63_v49 = vld [vmem:[#allocation2] sm:$0xff]  ;;  %v207_v50 = vld [vmem:[#allocation7 + $0x8] sm:$0xff] }
  0x43   :  { %385 = vmatpush3.bf16.msra.mxu0 %v384_v19  ;;  %v404_v48 = vpack.c.bf16 %v80_v47, %v79_v46  ;;  %v209_v51 = vld [vmem:[#allocation7 + $0x18] sm:$0xff]  ;;  %v206_v53 = vld [vmem:[#allocation7] sm:$0xff]  ;;  %v208_v54 = vld [vmem:[#allocation7 + $0x10] sm:$0xff] }
  0x44   :  { %387 = vmatprep.subr.bf16.mxu0 %v386_v20  ;;  %v406_v52 = vpack.c.bf16 %v209_v51, %v207_v50  ;;  %v408_v55 = vpack.c.bf16 %v208_v54, %v206_v53  ;;  %v211_v56 = vld [vmem:[#allocation7 + $0x28] sm:$0xff]  ;;  %v213_v57 = vld [vmem:[#allocation7 + $0x38] sm:$0xff]  ;;  %v210_v59 = vld [vmem:[#allocation7 + $0x20] sm:$0xff] }
  0x45   :  { %v410_v58 = vpack.c.bf16 %v213_v57, %v211_v56  ;;  %v212_v60 = vld [vmem:[#allocation7 + $0x30] sm:$0xff]  ;;  %v215_v62 = vld [vmem:[#allocation7 + $0x48] sm:$0xff]  ;;  %v217_v63 = vld [vmem:[#allocation7 + $0x58] sm:$0xff]  ;;  %v192_v56 = vlaneseq }
  0x46   :  { %407 = vmatprep.subr.bf16.mxu1 %v406_v52  ;;  %v412_v61 = vpack.c.bf16 %v212_v60, %v210_v59  ;;  %v214_v0 = vld [vmem:[#allocation7 + $0x40] sm:$0xff]  ;;  %v414_v1 = vpack.c.bf16 %v217_v63, %v215_v62  ;;  %v216_v2 = vld [vmem:[#allocation7 + $0x50] sm:$0xff]  ;;  %v219_v3 = vld [vmem:[#allocation7 + $0x68] sm:$0xff] }
  0x47   :  { %389 = vmatpush3.bf16.msra.mxu0 %v388_v26  ;;  %409 = vmatpush1.bf16.msra.mxu1 %v408_v55  ;;  %v221_v4 = vld [vmem:[#allocation7 + $0x78] sm:$0xff]  ;;  %v416_v6 = vpack.c.bf16 %v216_v2, %v214_v0  ;;  %v218_v8 = vld [vmem:[#allocation7 + $0x60] sm:$0xff]  ;;  %v220_v9 = vld [vmem:[#allocation7 + $0x70] sm:$0xff]  ;;  %v193_v57 = vshrl.u32 %v192_v56, 7 }
  0x48   :  { %391 = vmatprep.subr.bf16.mxu0 %v390_v27  ;;  %411 = vmatprep.subr.bf16.mxu1 %v410_v58  ;;  %v418_v7 = vpack.c.bf16 %v221_v4, %v219_v3  ;;  %v223_v10 = vld [vmem:[#allocation7 + $0x88] sm:$0xff]  ;;  %v225_v11 = vld [vmem:[#allocation7 + $0x98] sm:$0xff]  ;;  %v420_v12 = vpack.c.bf16 %v220_v9, %v218_v8  ;;  %v222_v14 = vld [vmem:[#allocation7 + $0x80] sm:$0xff] }
  0x49   :  { %v422_v13 = vpack.c.bf16 %v225_v11, %v223_v10  ;;  %v224_v15 = vld [vmem:[#allocation7 + $0x90] sm:$0xff]  ;;  %v227_v16 = vld [vmem:[#allocation7 + $0xa8] sm:$0xff]  ;;  %v229_v17 = vld [vmem:[#allocation7 + $0xb8] sm:$0xff]  ;;  %v194_v59 = vsub.s32 0, %v193_v57 }
  0x4a   :  { %v424_v18 = vpack.c.bf16 %v224_v15, %v222_v14  ;;  %v426_v19 = vpack.c.bf16 %v229_v17, %v227_v16  ;;  %v226_v20 = vld [vmem:[#allocation7 + $0xa0] sm:$0xff]  ;;  %v228_v21 = vld [vmem:[#allocation7 + $0xb0] sm:$0xff]  ;;  %v231_v22 = vld [vmem:[#allocation7 + $0xc8] sm:$0xff] }
  0x4b   :  { %393 = vmatpush3.bf16.msra.mxu0 %v392_v32  ;;  %413 = vmatpush1.bf16.msra.mxu1 %v412_v61  ;;  %v233_v23 = vld [vmem:[#allocation7 + $0xd8] sm:$0xff]  ;;  %v428_v24 = vpack.c.bf16 %v228_v21, %v226_v20  ;;  %v230_v26 = vld [vmem:[#allocation7 + $0xc0] sm:$0xff]  ;;  %v232_v27 = vld [vmem:[#allocation7 + $0xd0] sm:$0xff] }
  0x4c   :  { %395 = vmatprep.subr.bf16.mxu0 %v394_v33  ;;  %415 = vmatprep.subr.bf16.mxu1 %v414_v1  ;;  %v430_v25 = vpack.c.bf16 %v233_v23, %v231_v22  ;;  %v235_v28 = vld [vmem:[#allocation7 + $0xe8] sm:$0xff]  ;;  %v237_v29 = vld [vmem:[#allocation7 + $0xf8] sm:$0xff]  ;;  %v432_v30 = vpack.c.bf16 %v232_v27, %v230_v26  ;;  %v234_v32 = vld [vmem:[#allocation7 + $0xe0] sm:$0xff] }
  0x4d   :  { %v434_v31 = vpack.c.bf16 %v237_v29, %v235_v28  ;;  %v236_v33 = vld [vmem:[#allocation7 + $0xf0] sm:$0xff] }
  0x4e   :  { %v436_v34 = vpack.c.bf16 %v236_v33, %v234_v32  ;;  %v184_v58 = vld [vmem:[%s646_s2] sm:$0x1]  ;;  %s551_s2 = smov [#allocation8]  }
  0x4f   :  { %397 = vmatpush3.bf16.msra.mxu0 %v396_v38  ;;  %417 = vmatpush1.bf16.msra.mxu1 %v416_v6  ;;  %v188_v62 = vld [vmem:[%s647_s3] sm:$0x1]  ;;  %s329_s16 = sshll.u32 %s551_s2, 4  ;;  %s330_s16 = int_to_ptr.vmem [resolvable:$true] %s329_s16 }
  0x50   :  { %399 = vmatprep.subr.bf16.mxu0 %v398_v39  ;;  %419 = vmatprep.subr.bf16.mxu1 %v418_v7  ;;  %v238_v6 = vld [vmem:[%s649_s5] sm:$0x3]  ;;  %v246_v7 = vsub.s32 1, %v193_v57  ;;  %s515_s3 = scalar_lea.vmem %s330_s16, 256  ;;  %p520_p11 = scmp.lt.s32.totalorder %s330_s16, %s330_s16 }
  0x51   :  { %v243_v8 = vrot.slane %v238_v6, %v194_v59  ;;  %p516_p10 = scmp.ne.s32.totalorder %s330_s16, %s515_s3  ;;  %p521_p12 = scmp.lt.s32.totalorder %s515_s3, %s515_s3 }
  0x52   :  { %v247_v9 = vrot.slane %v238_v6, %v246_v7 }
  0x53   :  { %401 = vmatpush3.bf16.msra.mxu0 %v400_v44  ;;  %421 = vmatpush1.bf16.msra.mxu1 %v420_v12  ;;  %p522_p13 = por %p521_p12, %p520_p11 }
  0x54   :  { %403 = vmatprep.subr.bf16.mxu0 %v402_v45  ;;  %423 = vmatprep.subr.bf16.mxu1 %v422_v13 }
  0x55   :  { %p523_p0 = pnand %p522_p13, %p516_p10 }
  0x57   :  { %405 = vmatpush3.bf16.msra.mxu0 %v404_v48  ;;  %425 = vmatpush1.bf16.msra.mxu1 %v424_v18 }
  0x58   :  { %427 = vmatprep.subr.bf16.mxu1 %v426_v19 }
  0x5a   :  { %162 = vmatmul.mubr.f32.vlgmr.msra.gmra.mrb[0].mxu0 %v63_v49 }
  0x5b   :  { %429 = vmatpush1.bf16.msra.mxu1 %v428_v24 }
  0x5c   :  { %431 = vmatprep.subr.bf16.mxu1 %v430_v25 }
  0x5f   :  { %433 = vmatpush1.bf16.msra.mxu1 %v432_v30 }
  0x60   :  { %435 = vmatprep.subr.bf16.mxu1 %v434_v31 }
  0x63   :  { %437 = vmatpush1.bf16.msra.mxu1 %v436_v34 }
 0x12d   :  { %v371_v35 = vpop.f32.mrb[0].mxu0 }
 0x12e   :  { %v372_v36 = vpop.f32.mrb[1].mxu0 }
 0x12f   :  { %v373_v37 = vadd.f32 %v372_v36, %v371_v35 }
 0x131   :  { %v167_v38 = vrot.slane %v373_v37, 4  ;;  %v173_v39 = vmul.f32 %v373_v37, %v373_v37 }
 0x133   :  { %v168_v40 = vadd.f32 %v373_v37, %v167_v38  ;;  %v174_v41 = vrot.slane %v173_v39, 4 }
 0x135   :  { %v169_v42 = vrot.slane %v168_v40, 2  ;;  %v175_v43 = vadd.f32 %v174_v41, %v173_v39 }
 0x137   :  { %v170_v44 = vadd.f32 %v169_v42, %v168_v40  ;;  %v176_v45 = vrot.slane %v175_v43, 2 }
 0x139   :  { %v171_v46 = vrot.slane %v170_v44, 1  ;;  %v177_v47 = vadd.f32 %v176_v45, %v175_v43 }
 0x13b   :  { %v172_v48 = vadd.f32 %v171_v46, %v170_v44  ;;  %v178_v49 = vrot.slane %v177_v47, 1 }
 0x13d   :  { %v179_v50 = vadd.f32 %v178_v49, %v177_v47  ;;  %v180_v51 = vmul.f32 0.125, %v172_v48 }
 0x13f   :  { %v181_v52 = vmul.f32 0.125, %v179_v50  ;;  %v182_v53 = vmul.f32 %v180_v51, %v180_v51 }
 0x141   :  { %v183_v54 = vsub.f32 %v181_v52, %v182_v53 }
 0x143   :  { %v185_v55 = vadd.f32 1e-05, %v183_v54 }
 0x145   :  { %447 = vrsqrt.f32 %v185_v55 }
 0x14f   :  { %v448_v60 = vpop.eup %447 }
 0x150   :  { %v187_v61 = vmul.f32 %v448_v60, %v184_v58 }
 0x152   :  { %v189_v63 = vmul.f32 %v187_v61, %v180_v51  ;;  %v195_v0 = vrot.slane %v187_v61, %v194_v59 }
 0x154   :  { %v190_v1 = vsub.f32 %v188_v62, %v189_v63  ;;  %v197_v2 = vmul.f32 %v373_v37, %v195_v0 }
 0x156   :  { %v202_v3 = vrot.slane %v190_v1, %v194_v59 }
 0x158   :  { %v204_v4 = vadd.f32 %v202_v3, %v197_v2 }
 0x15a   :  { %v205_v5 = vmax.f32 %v204_v4, 0.0 }
 0x15c   :  { %315 = vmatmul.mubr.f32.vlgmr.msra.gmra.mrb[0].mxu1 %v205_v5 }
 0x22f   :  { %v316_v10 = vpop.f32.mrb[0].mxu1 }
 0x230   :  { %v317_v11 = vadd.f32 %v316_v10, %v243_v8  ;;  %v318_v12 = vpop.f32.mrb[1].mxu1 }
 0x231   :  { %v319_v13 = vadd.f32 %v318_v12, %v247_v9 }
 0x232   :  { %321 = vst [vmem:[#allocation8] sm:$0xff] %v317_v11 }
 0x233   :  { %322 = vst [vmem:[#allocation8 + $0x8] sm:$0xff] %v319_v13 }
 0x234   :  { %526 = shalt.err (!%p523_p0)
}
 0x235   :  { %s527_s18 = scalar_lea.hbm %s650_s6, 256 }
 0x236   :  { %p528_p1 = scmp.ne.s32.totalorder %s650_s6, %s527_s18  ;;  %p531_p2 = scmp.lt.u32.totalorder %s527_s18, %s650_s6 }
 0x238   :  { %p533_p3 = pnand %p531_p2, %p528_p1 }
 0x23a   :  { %536 = shalt.err (!%p533_p3)
}
 0x23b   :  { %332 = dma.vmem_to_hbm [thread:$0]  %s330_s16, 256, %s650_s6, [#allocation4]  }
 0x23c   :  { %541 = dma.done.wait [#allocation4], 256  }
 0x23d   :  { %542 = vsyncadd [#allocation4], 4294967040 }
 0x23e   :  { %336 = vsyncpa [#allocation3], 1 }
 0x23f   :  { %337 = vsyncpa [#allocation6], 1 }
 0x240   :  { %338 = vsyncpa [#allocation4], 1 }

</bundles_post_ra>
